<compile_context>
chip_gen: v7x
topology: tpu7x:2x2x1
jax: 0.10.0
libtpu: 0.0.40
codegen_flags: <defaults>
</compile_context>

<pallas_src>
import functools

import jax
import jax.numpy as jnp
from jax.experimental import pallas as pl
from jax.experimental.pallas import tpu as pltpu

LANE = 128            # TPU lane width
HID = 80              # MLP/Generator hidden width (nn.Linear(_, 80))
HID_SLAB = 2 * LANE   # hidden slab: [h_t(80) pad | h_a(80) pad]


def _round_up(x, m):
    return (x + m - 1) // m * m


# -----------------------------------------------------------------------------
# Fused kernel: entire Model0 hot path (g_t, g_a, g_t2a, g_a2t — two Linears
# each, no activation/dropout in their forward).  4 MXU dots, f32 accumulate.
# -----------------------------------------------------------------------------
def _model0_fused_kernel(sa_ref, ro_ref,
                         w1t_ref, w1a_ref, b1_ref,
                         w2_ref, b2_ref, w3_ref, b3_ref, w4_ref, b4_ref,
                         emb_ref, gen_ref):
    sa = sa_ref[...].astype(jnp.bfloat16)                      # (tn, 32)
    ro = ro_ref[...].astype(jnp.bfloat16)                      # (tn, 32)

    # layer 1 (g_t.l1 | g_a.l1): per-path dots, concat at the 128-lane boundary
    h_t = jnp.dot(sa, w1t_ref[...], preferred_element_type=jnp.float32)   # (tn,128)
    h_a = jnp.dot(ro, w1a_ref[...], preferred_element_type=jnp.float32)   # (tn,128)
    h1 = jnp.concatenate([h_t, h_a], axis=-1) + b1_ref[...]               # (tn,256)

    # layer 2 (g_t.l2 | g_a.l2): 256 -> 128 emb slab [MLP_sa | MLP_ro | 0]
    emb = jnp.dot(h1.astype(jnp.bfloat16), w2_ref[...],
                  preferred_element_type=jnp.float32) + b2_ref[...]
    emb_ref[...] = emb.astype(emb_ref.dtype)

    # layer 3 (g_t2a.l1 | g_a2t.l1): 128 -> 256 hidden slab
    h2 = jnp.dot(emb.astype(jnp.bfloat16), w3_ref[...],
                 preferred_element_type=jnp.float32) + b3_ref[...]

    # layer 4 (g_t2a.l2 | g_a2t.l2): 256 -> 128 gen slab [t2a | a2t | 0]
    gen = jnp.dot(h2.astype(jnp.bfloat16), w4_ref[...],
                  preferred_element_type=jnp.float32) + b4_ref[...]
    gen_ref[...] = gen.astype(gen_ref.dtype)


def _choose_tile_n(n, tile_n_max=1024):
    # >=2 grid steps when N allows (shards rows across v7x's 2 TensorCores),
    # rows a multiple of 8 sublanes, capped so streamed VMEM stays small.
    half = _round_up(max((n + 1) // 2, 1), 8)
    return max(8, min(tile_n_max, half))


def model0_fused(sa_p, ro_p, packed, *, tile_n_max=1024):
    """sa_p:(N, dt), ro_p:(N, da) f32 -> (emb:(N,128), gen:(N,128)) f32 slabs."""
    w1t, w1a, b1, w2, b2, w3, b3, w4, b4 = packed
    n, dt = sa_p.shape
    _, da = ro_p.shape

    tile_n = _choose_tile_n(n, tile_n_max)
    n_pad = _round_up(n, tile_n)
    if n_pad != n:
        sa_p = jnp.pad(sa_p, ((0, n_pad - n), (0, 0)))
        ro_p = jnp.pad(ro_p, ((0, n_pad - n), (0, 0)))
    grid = (n_pad // tile_n,)

    row_in_t = pl.BlockSpec((tile_n, dt), lambda i: (i, 0))
    row_in_a = pl.BlockSpec((tile_n, da), lambda i: (i, 0))
    row_out = pl.BlockSpec((tile_n, LANE), lambda i: (i, 0))

    def const_spec(arr):                     # grid-invariant operand (fetched once)
        return pl.BlockSpec(arr.shape, lambda i: (0,) * arr.ndim)

    flops = 2 * n_pad * LANE * (dt + da + 3 * HID_SLAB)
    bytes_accessed = (
        4 * n_pad * (dt + da)                                    # f32 row inputs
        + 4 * n_pad * 2 * LANE                                   # f32 emb+gen outputs
        + 2 * sum(w.size for w in (w1t, w1a, w2, w3, w4))        # bf16 weights
        + 4 * sum(b.size for b in (b1, b2, b3, b4)))             # f32 biases

    emb, gen = pl.pallas_call(
        _model0_fused_kernel,
        out_shape=(jax.ShapeDtypeStruct((n_pad, LANE), jnp.float32),
                   jax.ShapeDtypeStruct((n_pad, LANE), jnp.float32)),
        grid=grid,
        in_specs=[row_in_t, row_in_a,
                  const_spec(w1t), const_spec(w1a), const_spec(b1),
                  const_spec(w2), const_spec(b2),
                  const_spec(w3), const_spec(b3),
                  const_spec(w4), const_spec(b4)],
        out_specs=(row_out, row_out),
        compiler_params=pltpu.CompilerParams(dimension_semantics=("parallel",)),
        cost_estimate=pl.CostEstimate(flops=flops, transcendentals=0,
                                      bytes_accessed=bytes_accessed),
    )(sa_p, ro_p, w1t, w1a, b1, w2, b2, w3, b3, w4, b4)
    return emb[:n], gen[:n]


# -----------------------------------------------------------------------------
# Parameters: PyTorch nn.Linear default init (U(-k,k), k=1/sqrt(fan_in)),
# stored pre-transposed (in,out), packed into zero-padded bf16 slabs.
# Zero padding in weights AND biases guarantees no cross-path leakage.
# -----------------------------------------------------------------------------
def init_linear(key, d_in, d_out):
    kw, kb = jax.random.split(key)
    k = 1.0 / jnp.sqrt(jnp.float32(d_in))
    w = jax.random.uniform(kw, (d_in, d_out), jnp.float32, -k, k)
    b = jax.random.uniform(kb, (d_out,), jnp.float32, -k, k)
    return w, b


def _place(slab, block, r0, c0):
    return slab.at[r0:r0 + block.shape[0], c0:c0 + block.shape[1]].set(block)


def _place_bias(slab, vec, c0):
    return slab.at[0, c0:c0 + vec.shape[0]].set(vec)


class Model0Params:
    def __init__(self, key, gcn_outputs, num_outputs, attr_dim, hidden=HID):
        assert hidden <= LANE and 2 * num_outputs <= LANE
        assert attr_dim + gcn_outputs <= LANE
        k = jax.random.split(key, 8)
        gt_w1, gt_b1 = init_linear(k[0], gcn_outputs, hidden)    # g_t.l1
        gt_w2, gt_b2 = init_linear(k[1], hidden, num_outputs)    # g_t.l2
        t2a_w1, t2a_b1 = init_linear(k[2], num_outputs, hidden)  # g_t2a.l1
        t2a_w2, t2a_b2 = init_linear(k[3], hidden, attr_dim)     # g_t2a.l2
        ga_w1, ga_b1 = init_linear(k[4], attr_dim, hidden)       # g_a.l1
        ga_w2, ga_b2 = init_linear(k[5], hidden, num_outputs)    # g_a.l2
        a2t_w1, a2t_b1 = init_linear(k[6], num_outputs, hidden)  # g_a2t.l1
        a2t_w2, a2t_b2 = init_linear(k[7], hidden, gcn_outputs)  # g_a2t.l2

        # input lanes padded to a 16-multiple so bf16 contraction dims align
        self.in_pad_t = _round_up(gcn_outputs, 16)
        self.in_pad_a = _round_up(attr_dim, 16)

        f32z = functools.partial(jnp.zeros, dtype=jnp.float32)
        # layer 1: per-path (in_pad, 128) weights; hidden lives in lanes [0:80)
        w1t = _place(f32z((self.in_pad_t, LANE)), gt_w1, 0, 0)
        w1a = _place(f32z((self.in_pad_a, LANE)), ga_w1, 0, 0)
        b1 = _place_bias(_place_bias(f32z((1, HID_SLAB)), gt_b1, 0), ga_b1, LANE)
        # layer 2: 256 -> 128 emb slab [MLP_sa(0:24) | MLP_ro(24:48) | 0]
        w2 = _place(_place(f32z((HID_SLAB, LANE)), gt_w2, 0, 0),
                    ga_w2, LANE, num_outputs)
        b2 = _place_bias(_place_bias(f32z((1, LANE)), gt_b2, 0), ga_b2, num_outputs)
        # layer 3: 128 -> 256 hidden slab [h_t2a(0:80) | h_a2t(128:208)]
        w3 = _place(_place(f32z((LANE, HID_SLAB)), t2a_w1, 0, 0),
                    a2t_w1, num_outputs, LANE)
        b3 = _place_bias(_place_bias(f32z((1, HID_SLAB)), t2a_b1, 0), a2t_b1, LANE)
        # layer 4: 256 -> 128 gen slab [t2a(0:attr) | a2t(attr:attr+gcn) | 0]
        w4 = _place(_place(f32z((HID_SLAB, LANE)), t2a_w2, 0, 0),
                    a2t_w2, LANE, attr_dim)
        b4 = _place_bias(_place_bias(f32z((1, LANE)), t2a_b2, 0), a2t_b2, attr_dim)

        bf = lambda a: a.astype(jnp.bfloat16)
        self.packed = (bf(w1t), bf(w1a), b1, bf(w2), b2, bf(w3), b3, bf(w4), b4)
        self.dims = (gcn_outputs, num_outputs, attr_dim,
                     self.in_pad_t, self.in_pad_a)
        # logical f32 weights kept only for the reference check in __main__
        self.logical = ((gt_w1, gt_b1, gt_w2, gt_b2),
                        (t2a_w1, t2a_b1, t2a_w2, t2a_b2),
                        (ga_w1, ga_b1, ga_w2, ga_b2),
                        (a2t_w1, a2t_b1, a2t_w2, a2t_b2))


# -----------------------------------------------------------------------------
# Forward pass (Model0.forward semantics)
# -----------------------------------------------------------------------------
@functools.partial(jax.jit, static_argnums=(1,))
def model0_forward(packed, dims, sa, ro, x):
    gcn_outputs, num_outputs, attr_dim, in_pad_t, in_pad_a = dims
    sa_p = jnp.pad(sa, ((0, 0), (0, in_pad_t - gcn_outputs)))
    ro_p = jnp.pad(ro, ((0, 0), (0, in_pad_a - attr_dim)))

    emb, gen = model0_fused(sa_p, ro_p, packed)

    t2a_mtx = gen[:, :attr_dim]
    a2t_mtx = gen[:, attr_dim:attr_dim + gcn_outputs]

    # original: embedding = torch.hstack([MLP_sa, MLP_ro]) -> contiguous slice of emb
    embedding = emb[:, :2 * num_outputs]
    x1 = jnp.take(embedding, x[:, 0], axis=0)
    x2 = jnp.take(embedding, x[:, 1], axis=0)
    pair_features = jnp.concatenate([x1, x2], axis=1)      # (P, 4*num_outputs)

    # TODO(synk): original forward does `output = DNN(X, 1)` (constructs a module
    # with a tensor arg, uses undefined `tf`, reads data_array.csv) — not an
    # executable path, so the gathered pair features are returned as `output`.
    output = pair_features

    return t2a_mtx, a2t_mtx, t2a_mtx, a2t_mtx, output


if __name__ == "__main__":
    num_nodes = 16
    gcn_outputs = 32
    gcn_hidden = 64   # accepted by Model0.__init__ but unused in forward
    num_outputs = 24
    attr_dim = 28
    num_pairs = 8

    key = jax.random.PRNGKey(0)
    kp, ksa, kro, kx = jax.random.split(key, 4)

    params = Model0Params(kp, gcn_outputs, num_outputs, attr_dim)

    sa = jax.random.normal(ksa, (num_nodes, gcn_outputs), jnp.float32)
    ro = jax.random.normal(kro, (num_nodes, attr_dim), jnp.float32)
    x = jax.random.randint(kx, (num_pairs, 2), 0, num_nodes, jnp.int32)

    outs = jax.block_until_ready(
        model0_forward(params.packed, params.dims, sa, ro, x))
    t2a_mtx, a2t_mtx, _, _, output = outs

    assert t2a_mtx.shape == (num_nodes, attr_dim)
    assert a2t_mtx.shape == (num_nodes, gcn_outputs)
    assert output.shape == (num_pairs, 4 * num_outputs)

    # pure-JAX f32 reference (unpadded, per-path) for correctness
    (gt, t2a, ga, a2t) = params.logical
    def two_lin(z, p):
        w1_, b1_, w2_, b2_ = p
        return (z @ w1_ + b1_) @ w2_ + b2_
    mlp_sa_ref = two_lin(sa, gt)
    mlp_ro_ref = two_lin(ro, ga)
    ref_t2a = two_lin(mlp_sa_ref, t2a)
    ref_a2t = two_lin(mlp_ro_ref, a2t)
    emb_ref = jnp.concatenate([mlp_sa_ref, mlp_ro_ref], axis=1)
    ref_out = jnp.concatenate([jnp.take(emb_ref, x[:, 0], axis=0),
                               jnp.take(emb_ref, x[:, 1], axis=0)], axis=1)

    assert jnp.allclose(t2a_mtx, ref_t2a, rtol=2e-2, atol=2e-2)
    assert jnp.allclose(a2t_mtx, ref_a2t, rtol=2e-2, atol=2e-2)
    assert jnp.allclose(output, ref_out, rtol=2e-2, atol=2e-2)
    assert all(bool(jnp.isfinite(o).all()) for o in (t2a_mtx, a2t_mtx, output))

    print("KERNEL_OK")
</pallas_src>

<mosaic_0001>
module attributes {stable_mosaic.version = 11 : i64} {
  func.func @_model0_fused_kernel(%arg0: i32, %arg1: memref<8x32xf32, #tpu.memory_space<vmem>>, %arg2: memref<8x32xf32, #tpu.memory_space<vmem>>, %arg3: memref<32x128xbf16, #tpu.memory_space<vmem>>, %arg4: memref<32x128xbf16, #tpu.memory_space<vmem>>, %arg5: memref<1x256xf32, #tpu.memory_space<vmem>>, %arg6: memref<256x128xbf16, #tpu.memory_space<vmem>>, %arg7: memref<1x128xf32, #tpu.memory_space<vmem>>, %arg8: memref<128x256xbf16, #tpu.memory_space<vmem>>, %arg9: memref<1x256xf32, #tpu.memory_space<vmem>>, %arg10: memref<256x128xbf16, #tpu.memory_space<vmem>>, %arg11: memref<1x128xf32, #tpu.memory_space<vmem>>, %arg12: memref<8x128xf32, #tpu.memory_space<vmem>>, %arg13: memref<8x128xf32, #tpu.memory_space<vmem>>) attributes {dimension_semantics = [#tpu.dimension_semantics<parallel>], iteration_bounds = array<i64: 2>, scalar_prefetch = 0 : i64, scratch_operands = 0 : i64, tpu.core_type = #tpu.core_type<tc>, window_params = [{transform_indices = @transform_0, window_bounds = array<i64: 8, 32>}, {transform_indices = @transform_1, window_bounds = array<i64: 8, 32>}, {pipeline_mode = #tpu.pipeline_mode<synchronous>, transform_indices = @transform_2, window_bounds = array<i64: 32, 128>}, {pipeline_mode = #tpu.pipeline_mode<synchronous>, transform_indices = @transform_3, window_bounds = array<i64: 32, 128>}, {pipeline_mode = #tpu.pipeline_mode<synchronous>, transform_indices = @transform_4, window_bounds = array<i64: 1, 256>}, {pipeline_mode = #tpu.pipeline_mode<synchronous>, transform_indices = @transform_5, window_bounds = array<i64: 256, 128>}, {pipeline_mode = #tpu.pipeline_mode<synchronous>, transform_indices = @transform_6, window_bounds = array<i64: 1, 128>}, {pipeline_mode = #tpu.pipeline_mode<synchronous>, transform_indices = @transform_7, window_bounds = array<i64: 128, 256>}, {pipeline_mode = #tpu.pipeline_mode<synchronous>, transform_indices = @transform_8, window_bounds = array<i64: 1, 256>}, {pipeline_mode = #tpu.pipeline_mode<synchronous>, transform_indices = @transform_9, window_bounds = array<i64: 256, 128>}, {pipeline_mode = #tpu.pipeline_mode<synchronous>, transform_indices = @transform_10, window_bounds = array<i64: 1, 128>}, {transform_indices = @transform_11, window_bounds = array<i64: 8, 128>}, {transform_indices = @transform_12, window_bounds = array<i64: 8, 128>}]} {
    %c0 = arith.constant 0 : index
    %c0_0 = arith.constant 0 : index
    %0 = vector.load %arg1[%c0, %c0_0] : memref<8x32xf32, #tpu.memory_space<vmem>>, vector<8x32xf32>
    %1 = arith.truncf %0 : vector<8x32xf32> to vector<8x32xbf16>
    %c0_1 = arith.constant 0 : index
    %c0_2 = arith.constant 0 : index
    %2 = vector.load %arg2[%c0_1, %c0_2] : memref<8x32xf32, #tpu.memory_space<vmem>>, vector<8x32xf32>
    %3 = arith.truncf %2 : vector<8x32xf32> to vector<8x32xbf16>
    %c0_3 = arith.constant 0 : index
    %c0_4 = arith.constant 0 : index
    %4 = vector.load %arg3[%c0_3, %c0_4] : memref<32x128xbf16, #tpu.memory_space<vmem>>, vector<32x128xbf16>
    %cst = arith.constant dense<0.000000e+00> : vector<8x128xf32>
    %5 = tpu.matmul %1, %4, %cst {dimension_numbers = #tpu.dot_dimension_numbers<[1], [0], [0], [1], [0, 0, 1, 1], [], []>} : vector<8x32xbf16>, vector<32x128xbf16>, vector<8x128xf32> -> vector<8x128xf32>
    %c0_5 = arith.constant 0 : index
    %c0_6 = arith.constant 0 : index
    %6 = vector.load %arg4[%c0_5, %c0_6] : memref<32x128xbf16, #tpu.memory_space<vmem>>, vector<32x128xbf16>
    %cst_7 = arith.constant dense<0.000000e+00> : vector<8x128xf32>
    %7 = tpu.matmul %3, %6, %cst_7 {dimension_numbers = #tpu.dot_dimension_numbers<[1], [0], [0], [1], [0, 0, 1, 1], [], []>} : vector<8x32xbf16>, vector<32x128xbf16>, vector<8x128xf32> -> vector<8x128xf32>
    %8 = tpu.concatenate %5, %7 in 1 : vector<8x128xf32>, vector<8x128xf32> -> vector<8x256xf32>
    %c0_8 = arith.constant 0 : index
    %c0_9 = arith.constant 0 : index
    %9 = vector.load %arg5[%c0_8, %c0_9] : memref<1x256xf32, #tpu.memory_space<vmem>>, vector<1x256xf32>
    %10 = vector.broadcast %9 : vector<1x256xf32> to vector<8x256xf32>
    %11 = arith.addf %8, %10 : vector<8x256xf32>
    %12 = arith.truncf %11 : vector<8x256xf32> to vector<8x256xbf16>
    %c0_10 = arith.constant 0 : index
    %c0_11 = arith.constant 0 : index
    %13 = vector.load %arg6[%c0_10, %c0_11] : memref<256x128xbf16, #tpu.memory_space<vmem>>, vector<256x128xbf16>
    %cst_12 = arith.constant dense<0.000000e+00> : vector<8x128xf32>
    %14 = tpu.matmul %12, %13, %cst_12 {dimension_numbers = #tpu.dot_dimension_numbers<[1], [0], [0], [1], [0, 0, 1, 1], [], []>} : vector<8x256xbf16>, vector<256x128xbf16>, vector<8x128xf32> -> vector<8x128xf32>
    %c0_13 = arith.constant 0 : index
    %c0_14 = arith.constant 0 : index
    %15 = vector.load %arg7[%c0_13, %c0_14] : memref<1x128xf32, #tpu.memory_space<vmem>>, vector<1x128xf32>
    %16 = vector.broadcast %15 : vector<1x128xf32> to vector<8x128xf32>
    %17 = arith.addf %14, %16 : vector<8x128xf32>
    %c0_15 = arith.constant 0 : index
    %c0_16 = arith.constant 0 : index
    %18 = vector.load %arg12[%c0_15, %c0_16] : memref<8x128xf32, #tpu.memory_space<vmem>>, vector<8x128xf32>
    tpu.vector_store %arg12[%c0_15, %c0_16], %17 {strides = array<i32>} : memref<8x128xf32, #tpu.memory_space<vmem>>, vector<8x128xf32>,
    %19 = arith.truncf %17 : vector<8x128xf32> to vector<8x128xbf16>
    %c0_17 = arith.constant 0 : index
    %c0_18 = arith.constant 0 : index
    %20 = vector.load %arg8[%c0_17, %c0_18] : memref<128x256xbf16, #tpu.memory_space<vmem>>, vector<128x256xbf16>
    %cst_19 = arith.constant dense<0.000000e+00> : vector<8x256xf32>
    %21 = tpu.matmul %19, %20, %cst_19 {dimension_numbers = #tpu.dot_dimension_numbers<[1], [0], [0], [1], [0, 0, 1, 1], [], []>} : vector<8x128xbf16>, vector<128x256xbf16>, vector<8x256xf32> -> vector<8x256xf32>
    %c0_20 = arith.constant 0 : index
    %c0_21 = arith.constant 0 : index
    %22 = vector.load %arg9[%c0_20, %c0_21] : memref<1x256xf32, #tpu.memory_space<vmem>>, vector<1x256xf32>
    %23 = vector.broadcast %22 : vector<1x256xf32> to vector<8x256xf32>
    %24 = arith.addf %21, %23 : vector<8x256xf32>
    %25 = arith.truncf %24 : vector<8x256xf32> to vector<8x256xbf16>
    %c0_22 = arith.constant 0 : index
    %c0_23 = arith.constant 0 : index
    %26 = vector.load %arg10[%c0_22, %c0_23] : memref<256x128xbf16, #tpu.memory_space<vmem>>, vector<256x128xbf16>
    %cst_24 = arith.constant dense<0.000000e+00> : vector<8x128xf32>
    %27 = tpu.matmul %25, %26, %cst_24 {dimension_numbers = #tpu.dot_dimension_numbers<[1], [0], [0], [1], [0, 0, 1, 1], [], []>} : vector<8x256xbf16>, vector<256x128xbf16>, vector<8x128xf32> -> vector<8x128xf32>
    %c0_25 = arith.constant 0 : index
    %c0_26 = arith.constant 0 : index
    %28 = vector.load %arg11[%c0_25, %c0_26] : memref<1x128xf32, #tpu.memory_space<vmem>>, vector<1x128xf32>
    %29 = vector.broadcast %28 : vector<1x128xf32> to vector<8x128xf32>
    %30 = arith.addf %27, %29 : vector<8x128xf32>
    %c0_27 = arith.constant 0 : index
    %c0_28 = arith.constant 0 : index
    %31 = vector.load %arg13[%c0_27, %c0_28] : memref<8x128xf32, #tpu.memory_space<vmem>>, vector<8x128xf32>
    tpu.vector_store %arg13[%c0_27, %c0_28], %30 {strides = array<i32>} : memref<8x128xf32, #tpu.memory_space<vmem>>, vector<8x128xf32>,
    return
  }
  func.func @transform_0(%arg0: i32) -> (i32, i32) {
    %c0_i32 = arith.constant 0 : i32
    %c0_i32_0 = arith.constant 0 : i32
    return %arg0, %c0_i32 : i32, i32
  }
  func.func @transform_1(%arg0: i32) -> (i32, i32) {
    %c0_i32 = arith.constant 0 : i32
    %c0_i32_0 = arith.constant 0 : i32
    return %arg0, %c0_i32 : i32, i32
  }
  func.func @transform_2(%arg0: i32) -> (i32, i32) {
    %c0_i32 = arith.constant 0 : i32
    %c0_i32_0 = arith.constant 0 : i32
    %c0_i32_1 = arith.constant 0 : i32
    return %c0_i32, %c0_i32_0 : i32, i32
  }
  func.func @transform_3(%arg0: i32) -> (i32, i32) {
    %c0_i32 = arith.constant 0 : i32
    %c0_i32_0 = arith.constant 0 : i32
    %c0_i32_1 = arith.constant 0 : i32
    return %c0_i32, %c0_i32_0 : i32, i32
  }
  func.func @transform_4(%arg0: i32) -> (i32, i32) {
    %c0_i32 = arith.constant 0 : i32
    %c0_i32_0 = arith.constant 0 : i32
    %c0_i32_1 = arith.constant 0 : i32
    return %c0_i32, %c0_i32_0 : i32, i32
  }
  func.func @transform_5(%arg0: i32) -> (i32, i32) {
    %c0_i32 = arith.constant 0 : i32
    %c0_i32_0 = arith.constant 0 : i32
    %c0_i32_1 = arith.constant 0 : i32
    return %c0_i32, %c0_i32_0 : i32, i32
  }
  func.func @transform_6(%arg0: i32) -> (i32, i32) {
    %c0_i32 = arith.constant 0 : i32
    %c0_i32_0 = arith.constant 0 : i32
    %c0_i32_1 = arith.constant 0 : i32
    return %c0_i32, %c0_i32_0 : i32, i32
  }
  func.func @transform_7(%arg0: i32) -> (i32, i32) {
    %c0_i32 = arith.constant 0 : i32
    %c0_i32_0 = arith.constant 0 : i32
    %c0_i32_1 = arith.constant 0 : i32
    return %c0_i32, %c0_i32_0 : i32, i32
  }
  func.func @transform_8(%arg0: i32) -> (i32, i32) {
    %c0_i32 = arith.constant 0 : i32
    %c0_i32_0 = arith.constant 0 : i32
    %c0_i32_1 = arith.constant 0 : i32
    return %c0_i32, %c0_i32_0 : i32, i32
  }
  func.func @transform_9(%arg0: i32) -> (i32, i32) {
    %c0_i32 = arith.constant 0 : i32
    %c0_i32_0 = arith.constant 0 : i32
    %c0_i32_1 = arith.constant 0 : i32
    return %c0_i32, %c0_i32_0 : i32, i32
  }
  func.func @transform_10(%arg0: i32) -> (i32, i32) {
    %c0_i32 = arith.constant 0 : i32
    %c0_i32_0 = arith.constant 0 : i32
    %c0_i32_1 = arith.constant 0 : i32
    return %c0_i32, %c0_i32_0 : i32, i32
  }
  func.func @transform_11(%arg0: i32) -> (i32, i32) {
    %c0_i32 = arith.constant 0 : i32
    %c0_i32_0 = arith.constant 0 : i32
    return %arg0, %c0_i32 : i32, i32
  }
  func.func @transform_12(%arg0: i32) -> (i32, i32) {
    %c0_i32 = arith.constant 0 : i32
    %c0_i32_0 = arith.constant 0 : i32
    return %arg0, %c0_i32 : i32, i32
  }
}

</mosaic_0001>

<bundles_post_ra>
// kernel: model0_forward.1
= control target key start
LH: loop header
LB: loop body
LE: loop exit
PB: predicated region body
PF: predicated region fallthrough
CT: control target
= control target key end

     0   :  { %18 = vsyncpa [#allocation3], 0  ;;  %s1845_s0 = inlined_call_operand.vmem [shape: f32[16,32], index: 0, kind: input, shape index: {}]   ;;  %s1846_s1 = inlined_call_operand.vmem [shape: f32[16,32], index: 1, kind: input, shape index: {}]   ;;  %s1847_s2 = inlined_call_operand.vmem [shape: bf16[32,128], index: 2, kind: input, shape index: {}]   ;;  %s1848_s3 = inlined_call_operand.vmem [shape: bf16[32,128], index: 3, kind: input, shape index: {}]   ;;  %s1849_s4 = inlined_call_operand.vmem [shape: f32[1,256], index: 4, kind: input, shape index: {}]   ;;  %s1850_s5 = inlined_call_operand.hbm [shape: bf16[256,128], index: 5, kind: input, shape index: {}]   ;;  %s1851_s6 = inlined_call_operand.vmem [shape: f32[1,128], index: 6, kind: input, shape index: {}]   ;;  %s1852_s7 = inlined_call_operand.hbm [shape: bf16[128,256], index: 7, kind: input, shape index: {}]   ;;  %s1853_s8 = inlined_call_operand.vmem [shape: f32[1,256], index: 8, kind: input, shape index: {}]   ;;  %s1854_s9 = inlined_call_operand.hbm [shape: bf16[256,128], index: 9, kind: input, shape index: {}]   ;;  %s1855_s10 = inlined_call_operand.vmem [shape: f32[1,128], index: 10, kind: input, shape index: {}]   ;;  %s1856_s11 = inlined_call_operand.vmem [shape: f32[16,128], index: 11, kind: output, shape index: {0}]   ;;  %s1857_s12 = inlined_call_operand.vmem [shape: f32[16,128], index: 12, kind: output, shape index: {1}]  }
   0x1   :  { %19 = vsyncpa [#allocation5], 0  ;;  %s1672_s21 = smov 0  }
   0x2 LB: > { %1861 = sst [smem:[#allocation9_spill]] %s1595_s21  ;;  %s1597_s22 = smov [#allocation4]   ;;  %s1595_s21 = sphi %s1672_s21, %s25_s21  }
   0x3   : > { %s360_s23 = sshll.u32 %s1597_s22, 4  ;;  %s1678_s24 = sadd.s32 4294967295, %s1595_s21   ;;  %s1687_s23 = int_to_ptr.vmem [resolvable:$true] %s360_s23 }
   0x4   : > { %p1254_p0 = scmp.ge.s32.totalorder %s1595_s21, 1  ;;  %p323_p1 = scmp.lt.s32.totalorder %s1595_s21, 3 }
   0x5   : > { %p1859_p2 = scmp.eq.s32.totalorder %s1678_s24, 0  ;;  %s1598_s26 = smov [#allocation2]  }
   0x6   : > { %p1683_p3 = pnand %p1254_p0, %p323_p1  ;;  %s344_s27 = sshll.u32 %s1598_s26, 4  ;;  %s1691_s27 = int_to_ptr.vmem [resolvable:$true] %s344_s27 }
   0x7   : > { %s1599_s29 = smov [#allocation6]   ;;  %s1497_s15 = scalar_lea.hbm %s1852_s7, 2048 }
   0x8   : > { %s1862_s25 = scalar_select %p1683_p3, 1, 0 }
   0x9   : > { %p1403_p4 = pneg %p1683_p3  ;;  %s1699_s30 = sshll.u32 %s1599_s29, 4  ;;  %s377_s30 = int_to_ptr.vmem [resolvable:$true] %s1699_s30 }
   0xa   : > { %p1498_p6 = scmp.ne.s32.totalorder %s1852_s7, %s1497_s15  ;;  %p1504_p10 = scmp.lt.u32.totalorder %s1497_s15, %s1852_s7 }
   0xb   : > { %p1695_p5 = pnand %p1859_p2, %p1403_p4 }
   0xd   : > { %p1709_p7 = pneg %p1695_p5 }
   0xf   : > { %p1500_p8 = pnand %p1709_p7, %p1498_p6 }
  0x11   : > { %p1501_p9 = pneg %p1500_p8 }
  0x13   : > { %p1506_p11 = pnand %p1504_p10, %p1501_p9 }
  0x15   : > { %1509 = shalt.err (!%p1506_p11)
}
  0x16   : > { %s1510_s22 = scalar_lea.vmem %s1687_s23, 2048  ;;  %p1518_p1 = scmp.lt.s32.totalorder %s1687_s23, %s1687_s23 }
  0x17   : > { %p1511_p12 = scmp.ne.s32.totalorder %s1687_s23, %s1510_s22  ;;  %p1519_p4 = scmp.lt.s32.totalorder %s1510_s22, %s1510_s22 }
  0x19   : > { %p1513_p13 = pnand %p1511_p12, %p1709_p7  ;;  %p1520_p6 = por %p1519_p4, %p1518_p1 }
  0x1b   : > { %p1514_p0 = pneg %p1513_p13 }
  0x1d   : > { %p1521_p8 = pnand %p1520_p6, %p1514_p0 }
  0x1f   : > { %1524 = shalt.err (!%p1521_p8)
}
  0x20   : > { %s1600_s26 = smov 128   ;;  %s1601_s29 = smov 8  }
  0x21   : > { %1409 = dma.hbm_to_vmem [thread:$0]  (!%p1695_p5), %s1852_s7, 2048, %s1687_s23, [#allocation5], %s1600_s26, %s1600_s26, %s1601_s29  }
  0x22   : > { %s1525_s17 = scalar_lea.hbm %s1850_s5, 2048 }
  0x23   : > { %p1526_p9 = scmp.ne.s32.totalorder %s1850_s5, %s1525_s17  ;;  %p1532_p12 = scmp.lt.u32.totalorder %s1525_s17, %s1850_s5 }
  0x25   : > { %p1528_p10 = pnand %p1526_p9, %p1709_p7 }
  0x27   : > { %p1529_p11 = pneg %p1528_p10 }
  0x29   : > { %p1534_p13 = pnand %p1532_p12, %p1529_p11 }
  0x2b   : > { %1537 = shalt.err (!%p1534_p13)
}
  0x2c   : > { %s1538_s23 = scalar_lea.vmem %s1691_s27, 2048  ;;  %p1546_p6 = scmp.lt.s32.totalorder %s1691_s27, %s1691_s27 }
  0x2d   : > { %p1539_p0 = scmp.ne.s32.totalorder %s1691_s27, %s1538_s23  ;;  %p1547_p8 = scmp.lt.s32.totalorder %s1538_s23, %s1538_s23 }
  0x2f   : > { %p1541_p1 = pnand %p1539_p0, %p1709_p7  ;;  %p1548_p9 = por %p1547_p8, %p1546_p6 }
  0x31   : > { %p1542_p4 = pneg %p1541_p1 }
  0x33   : > { %p1549_p10 = pnand %p1548_p9, %p1542_p4 }
  0x35   : > { %1552 = shalt.err (!%p1549_p10)
}
  0x36   : > { %s1602_s26 = smov 64   ;;  %s1603_s21 = smov 4  }
  0x37   : > { %1406 = dma.hbm_to_vmem [thread:$0]  (!%p1695_p5), %s1850_s5, 2048, %s1691_s27, [#allocation3], %s1602_s26, %s1602_s26, %s1603_s21  }
  0x38   : > { %s1553_s16 = scalar_lea.hbm %s1854_s9, 2048 }
  0x39   : > { %p1554_p11 = scmp.ne.s32.totalorder %s1854_s9, %s1553_s16  ;;  %p1560_p0 = scmp.lt.u32.totalorder %s1553_s16, %s1854_s9 }
  0x3b   : > { %p1556_p12 = pnand %p1554_p11, %p1709_p7 }
  0x3d   : > { %p1557_p13 = pneg %p1556_p12 }
  0x3f   : > { %p1562_p1 = pnand %p1560_p0, %p1557_p13 }
  0x41   : > { %1565 = shalt.err (!%p1562_p1)
}
  0x42   : > { %s1566_s23 = scalar_lea.vmem %s377_s30, 2048  ;;  %p1574_p9 = scmp.lt.s32.totalorder %s377_s30, %s377_s30 }
  0x43   : > { %p1567_p4 = scmp.ne.s32.totalorder %s377_s30, %s1566_s23  ;;  %p1575_p10 = scmp.lt.s32.totalorder %s1566_s23, %s1566_s23 }
  0x45   : > { %p1569_p6 = pnand %p1567_p4, %p1709_p7  ;;  %p1576_p2 = por %p1575_p10, %p1574_p9 }
  0x47   : > { %p1570_p8 = pneg %p1569_p6 }
  0x49   : > { %p1577_p3 = pnand %p1576_p2, %p1570_p8 }
  0x4b   : > { %1580 = shalt.err (!%p1577_p3)
}
  0x4c   : > { %1412 = dma.hbm_to_vmem [thread:$0]  (!%p1695_p5), %s1854_s9, 2048, %s377_s30, [#allocation5], %s1602_s26, %s1602_s26, %s1603_s21  }
  0x4d   : > { %p1865_p11 = scmp.ne.s32.totalorder %s1862_s25, 0 }
  0x4e   : > { %p1866_p12 = scmp.eq.s32.totalorder (!%p1865_p11), %s1678_s24, 0 }
  0x4f   : > { %409 = sbr.rel (%p1865_p11) target bundleno = 980 (0x3d4), region = 64 }
  0x56   : > { %1586 = dma.done.wait (%p1866_p12), [#allocation3], 2048   ;;  %p1867_p7 = pmov %p1866_p12 }
  0x58   : > { %1588 = vsyncadd (%p1867_p7), [#allocation3], 4294965248  ;;  %p1868_p13 = pmov %p1867_p7 }
  0x59   : > { %p1869_p2 = pmov %p1867_p7 }
  0x5a   : > { %1590 = dma.done.wait (%p1868_p13), [#allocation5], 4096  }
  0x5b   : > { %1592 = vsyncadd (%p1869_p2), [#allocation5], 4294963200  ;;  %p465_p3 = scmp.lt.s32.totalorder %s1678_s24, 1  ;;  %v1604_v0 = vmov 0.0   ;;  %vm1605_vm0 = vmmov 0   ;;  %v1437_v1 = vld [vmem:[%s1847_s2] sm:$0xff]   ;;  %v607_v37 = vlaneseq }
  0x5c   : > { %1375 = vmatprep.subr.bf16.mxu1 %v1604_v0  ;;  %1379 = vmatprep.mubr.msk.bf16.mxu1 %vm1605_vm0, %v1604_v0  ;;  %v1438_v2 = vld [vmem:[%s1847_s2 + $0x8] sm:$0xff]   ;;  %v1439_v4 = vld [vmem:[%s1848_s3] sm:$0xff]   ;;  %vm502_vm1 = vcmask 261120   ;;  %v1445_v11 = vld [vmem:[#allocation2 + $0x50] sm:$0xff]   ;;  %v1606_v60 = vmov 0  }
  0x5d   : > { %s1872_s24 = smov (!%p465_p3, %s1678_s24), 1  ;;  %1376 = vmatpush3.bf16.msra.mxu1 %v1437_v1  ;;  %v1441_v6 = vld [vmem:[#allocation2 + $0x40] sm:$0xff]   ;;  %v1443_v8 = vld [vmem:[#allocation2 + $0x48] sm:$0xff]   ;;  %v1446_v13 = vld [vmem:[#allocation2 + $0x10] sm:$0xff]   ;;  %v1810_v38 = vshrl.u32 %v607_v37, 7 }
  0x5e   : > { %s1785_s25 = sshll.u32 %s1872_s24, 3  ;;  %1377 = vmatprep.subr.bf16.mxu1 %v1604_v0  ;;  %v1442_v7 = vld [vmem:[#allocation2] sm:$0xff]   ;;  %1331 = vmatprep.subr.bf16.mxu0 %v1441_v6  ;;  %v1440_v9 = vld [vmem:[%s1848_s3 + $0x8] sm:$0xff]   ;;  %v1447_v15 = vld [vmem:[#allocation2 + $0x58] sm:$0xff]  }
  0x5f   : > { %s468_s18 = scalar_lea.vmem %s1845_s0, %s1785_s25  ;;  %s472_s19 = scalar_lea.vmem %s1846_s1, %s1785_s25  ;;  %1332 = vmatpush3.bf16.msra.mxu0 %v1442_v7  ;;  %v1444_v10 = vld [vmem:[#allocation2 + $0x8] sm:$0xff]   ;;  %v1448_v16 = vld [vmem:[#allocation2 + $0x18] sm:$0xff]   ;;  %v1449_v17 = vld [vmem:[#allocation2 + $0x60] sm:$0xff]   ;;  %v609_v40 = vsub.s32 0, %v1810_v38  ;;  %v613_v43 = vsub.s32 1, %v1810_v38 }
  0x60   : > { %v482_v3 = vld [vmem:[%s468_s18] sm:$0xff]  ;;  %1333 = vmatprep.subr.bf16.mxu0 %v1443_v8  ;;  %v1451_v19 = vld [vmem:[#allocation2 + $0x68] sm:$0xff]   ;;  %v1453_v21 = vld [vmem:[#allocation2 + $0x70] sm:$0xff]   ;;  %s476_s26 = scalar_lea.vmem %s1856_s11, %s1785_s25  ;;  %s480_s17 = scalar_lea.vmem %s1857_s12, %s1785_s25 }
  0x61   : > { %v483_v5 = vpack.c.bf16 %v482_v3, %v482_v3  ;;  %1378 = vmatpush3.bf16.msra.mxu1 %v1438_v2  ;;  %v484_v12 = vld [vmem:[%s472_s19] sm:$0xff]  ;;  %v1452_v20 = vld [vmem:[#allocation2 + $0x28] sm:$0xff]   ;;  %v1454_v22 = vld [vmem:[#allocation2 + $0x30] sm:$0xff]  }
  0x62   : > { %1383 = vmatprep.subr.bf16.mxu1 %v1604_v0  ;;  %v485_v14 = vpack.c.bf16 %v484_v12, %v484_v12  ;;  %v1450_v18 = vld [vmem:[#allocation2 + $0x20] sm:$0xff]   ;;  %v1455_v23 = vld [vmem:[#allocation2 + $0x78] sm:$0xff]   ;;  %v1483_v63 = vld [vmem:[#allocation6 + $0x48] sm:$0xff]  }
  0x63   : > { %1334 = vmatpush3.bf16.msra.mxu0 %v1444_v10  ;;  %v1456_v24 = vld [vmem:[#allocation2 + $0x38] sm:$0xff]   ;;  %v1457_v25 = vld [vmem:[#allocation4] ss:$8 sps:$4 sm:$0xff]   ;;  %v1459_v26 = vld [vmem:[#allocation4 + $0x4] ss:$8 sps:$4 sm:$0xff]  }
  0x64   : > { %1380 = vmatmul.mubr.msk.bf16.vlgmr.msra.gmra.mrb[0].mxu1 %vm502_vm1, %v483_v5  ;;  %1335 = vmatprep.subr.bf16.mxu0 %v1445_v11  ;;  %v1462_v27 = vld [vmem:[#allocation4 + $0x14] ss:$8 sps:$4 sm:$0xff]   ;;  %v1460_v28 = vld [vmem:[#allocation4 + $0x10] ss:$8 sps:$4 sm:$0xff]   ;;  %v1465_v29 = vld [vmem:[#allocation4 + $0x24] ss:$8 sps:$4 sm:$0xff]  }
  0x65   : > { %1384 = vmatpush3.bf16.msra.mxu1 %v1439_v4  ;;  %1387 = vmatprep.mubr.msk.bf16.mxu1 %vm1605_vm0, %v1604_v0  ;;  %v1463_v30 = vld [vmem:[#allocation4 + $0x20] ss:$8 sps:$4 sm:$0xff]   ;;  %v1468_v31 = vld [vmem:[#allocation4 + $0x34] ss:$8 sps:$4 sm:$0xff]   ;;  %v1466_v32 = vld [vmem:[#allocation4 + $0x30] ss:$8 sps:$4 sm:$0xff]  }
  0x66   : > { %1385 = vmatprep.subr.bf16.mxu1 %v1604_v0  ;;  %v1471_v33 = vld [vmem:[#allocation4 + $0x44] ss:$8 sps:$4 sm:$0xff]   ;;  %v1469_v34 = vld [vmem:[#allocation4 + $0x40] ss:$8 sps:$4 sm:$0xff]   ;;  %v1474_v35 = vld [vmem:[#allocation4 + $0x54] ss:$8 sps:$4 sm:$0xff]  }
  0x67   : > { %1336 = vmatpush3.bf16.msra.mxu0 %v1446_v13  ;;  %v1472_v36 = vld [vmem:[#allocation4 + $0x50] ss:$8 sps:$4 sm:$0xff]   ;;  %v605_v41 = vld [vmem:[%s1849_s4] sm:$0x3]  ;;  %v1477_v56 = vld [vmem:[#allocation4 + $0x64] ss:$8 sps:$4 sm:$0xff]  }
  0x68   : > { %1337 = vmatprep.subr.bf16.mxu0 %v1447_v15  ;;  %v610_v46 = vrot.slane %v605_v41, %v609_v40  ;;  %v614_v47 = vrot.slane %v605_v41, %v613_v43  ;;  %v1475_v57 = vld [vmem:[#allocation4 + $0x60] ss:$8 sps:$4 sm:$0xff]   ;;  %v1480_v58 = vld [vmem:[#allocation4 + $0x74] ss:$8 sps:$4 sm:$0xff]   ;;  %v1478_v59 = vld [vmem:[#allocation4 + $0x70] ss:$8 sps:$4 sm:$0xff]  }
  0x69   : > { %1386 = vmatpush3.bf16.msra.mxu1 %v1440_v9  ;;  %v1481_v61 = vld [vmem:[#allocation6 + $0x40] sm:$0xff]   ;;  %v1484_v0 = vld [vmem:[#allocation6 + $0x8] sm:$0xff]   ;;  %v1485_v1 = vld [vmem:[#allocation6 + $0x50] sm:$0xff]  }
  0x6a   : > { %906 = vmatprep.subr.bf16.mxu1 %v1459_v26  ;;  %v1482_v62 = vld [vmem:[#allocation6] sm:$0xff]   ;;  %v1486_v2 = vld [vmem:[#allocation6 + $0x10] sm:$0xff]   ;;  %v1487_v3 = vld [vmem:[#allocation6 + $0x58] sm:$0xff]  }
  0x6b   : > { %1338 = vmatpush3.bf16.msra.mxu0 %v1448_v16  ;;  %v1488_v4 = vld [vmem:[#allocation6 + $0x18] sm:$0xff]   ;;  %v1489_v5 = vld [vmem:[#allocation6 + $0x60] sm:$0xff]   ;;  %v1491_v7 = vld [vmem:[#allocation6 + $0x68] sm:$0xff]  }
  0x6c   : > { %1388 = vmatmul.mubr.msk.bf16.vlgmr.msra.gmra.mrb[4].mxu1 %vm502_vm1, %v485_v14  ;;  %1339 = vmatprep.subr.bf16.mxu0 %v1449_v17  ;;  %v1490_v6 = vld [vmem:[#allocation6 + $0x20] sm:$0xff]   ;;  %v1492_v8 = vld [vmem:[#allocation6 + $0x28] sm:$0xff]   ;;  %v1493_v9 = vld [vmem:[#allocation6 + $0x70] sm:$0xff]  }
  0x6d   : > { %907 = vmatpush1.bf16.msra.mxu1 %v1457_v25  ;;  %938 = vmatprep.mubr.bf16.mxu1 %v1606_v60  ;;  %v1273_v11 = vld [vmem:[%s1851_s6] ss:$0 sm:$0xff] }
  0x6e   : > { %908 = vmatprep.subr.bf16.mxu1 %v1462_v27 }
  0x6f   : > { %1340 = vmatpush3.bf16.msra.mxu0 %v1450_v18  ;;  %v1494_v18 = vld [vmem:[#allocation6 + $0x30] sm:$0xff]  }
  0x70   : > { %1341 = vmatprep.subr.bf16.mxu0 %v1451_v19  ;;  %v1495_v19 = vld [vmem:[#allocation6 + $0x78] sm:$0xff]  }
  0x71   : > { %909 = vmatpush1.bf16.msra.mxu1 %v1460_v28 }
  0x72   : > { %910 = vmatprep.subr.bf16.mxu1 %v1465_v29 }
  0x73   : > { %1342 = vmatpush3.bf16.msra.mxu0 %v1452_v20  ;;  %v1496_v20 = vld [vmem:[#allocation6 + $0x38] sm:$0xff]  }
  0x74   : > { %1343 = vmatprep.subr.bf16.mxu0 %v1453_v21  ;;  %v814_v21 = vld [vmem:[%s1853_s8] sm:$0x3] }
  0x75   : > { %911 = vmatpush1.bf16.msra.mxu1 %v1463_v30 }
  0x76   : > { %912 = vmatprep.subr.bf16.mxu1 %v1468_v31 }
  0x77   : > { %1344 = vmatpush3.bf16.msra.mxu0 %v1454_v22  ;;  %v819_v22 = vrot.slane %v814_v21, %v609_v40 }
  0x78   : > { %1345 = vmatprep.subr.bf16.mxu0 %v1455_v23  ;;  %v823_v23 = vrot.slane %v814_v21, %v613_v43 }
  0x79   : > { %913 = vmatpush1.bf16.msra.mxu1 %v1466_v32 }
  0x7a   : > { %914 = vmatprep.subr.bf16.mxu1 %v1471_v33  ;;  %v1306_v33 = vld [vmem:[%s1855_s10] ss:$0 sm:$0xff] }
  0x7b   : > { %1346 = vmatpush3.bf16.msra.mxu0 %v1456_v24 }
  0x7c   : > { %1353 = vmatprep.subr.bf16.mxu0 %v1481_v61 }
  0x7d   : > { %915 = vmatpush1.bf16.msra.mxu1 %v1469_v34 }
  0x7e   : > { %916 = vmatprep.subr.bf16.mxu1 %v1474_v35 }
  0x81   : > { %917 = vmatpush1.bf16.msra.mxu1 %v1472_v36 }
  0x82   : > { %918 = vmatprep.subr.bf16.mxu1 %v1477_v56 }
  0x85   : > { %919 = vmatpush1.bf16.msra.mxu1 %v1475_v57 }
  0x86   : > { %920 = vmatprep.subr.bf16.mxu1 %v1480_v58 }
  0x89   : > { %921 = vmatpush1.bf16.msra.mxu1 %v1478_v59 }
 0x137   : > { %v540_v39 = vpop.f32.mrb[0].mxu1 }
 0x138   : > { %v1381_v42 = vpop.f32.mrb[1].mxu1  ;;  %v617_v48 = vadd.f32 %v610_v46, %v540_v39 }
 0x139   : > { %v543_v44 = vpop.f32.mrb[2].mxu1 }
 0x13a   : > { %v1382_v45 = vpop.f32.mrb[3].mxu1  ;;  %v619_v55 = vpack.c.bf16 %v617_v48, %v617_v48 }
 0x13f   : > { %v599_v49 = vpop.f32.mrb[4].mxu1 }
 0x140   : > { %v1389_v50 = vpop.f32.mrb[5].mxu1  ;;  %v618_v51 = vadd.f32 %v614_v47, %v599_v49 }
 0x141   : > { %v602_v52 = vpop.f32.mrb[6].mxu1 }
 0x142   : > { %v1390_v53 = vpop.f32.mrb[7].mxu1  ;;  %v620_v54 = vpack.c.bf16 %v618_v51, %v618_v51 }
 0x144   : > { %788 = vmatprep.mubr.bf16.mxu0 %v620_v54 }
 0x145   : > { %789 = vmatmul.mubr.bf16.vlgmr.msra.gmra.mrb[0].mxu0 %v619_v55 }
 0x146   : > { %1354 = vmatpush3.bf16.msra.mxu0 %v1482_v62 }
 0x147   : > { %1355 = vmatprep.subr.bf16.mxu0 %v1483_v63 }
 0x14a   : > { %1356 = vmatpush3.bf16.msra.mxu0 %v1484_v0 }
 0x14b   : > { %1357 = vmatprep.subr.bf16.mxu0 %v1485_v1 }
 0x14e   : > { %1358 = vmatpush3.bf16.msra.mxu0 %v1486_v2 }
 0x14f   : > { %1359 = vmatprep.subr.bf16.mxu0 %v1487_v3 }
 0x152   : > { %1360 = vmatpush3.bf16.msra.mxu0 %v1488_v4 }
 0x153   : > { %1361 = vmatprep.subr.bf16.mxu0 %v1489_v5 }
 0x156   : > { %1362 = vmatpush3.bf16.msra.mxu0 %v1490_v6 }
 0x157   : > { %1363 = vmatprep.subr.bf16.mxu0 %v1491_v7 }
 0x15a   : > { %1364 = vmatpush3.bf16.msra.mxu0 %v1492_v8 }
 0x15b   : > { %1365 = vmatprep.subr.bf16.mxu0 %v1493_v9 }
 0x15e   : > { %1366 = vmatpush3.bf16.msra.mxu0 %v1494_v18 }
 0x15f   : > { %1367 = vmatprep.subr.bf16.mxu0 %v1495_v19 }
 0x162   : > { %1368 = vmatpush3.bf16.msra.mxu0 %v1496_v20 }
 0x218   : > { %v1347_v10 = vpop.f32.mrb[0].mxu0 }
 0x219   : > { %v1348_v12 = vpop.f32.mrb[1].mxu0 }
 0x21a   : > { %v1349_v13 = vadd.f32 %v1348_v12, %v1347_v10  ;;  %v1350_v14 = vpop.f32.mrb[2].mxu0 }
 0x21b   : > { %v1351_v15 = vpop.f32.mrb[3].mxu0 }
 0x21c   : > { %v791_v16 = vadd.f32 %v1349_v13, %v1273_v11 }
 0x21e   : > { %796 = vst [vmem:[%s476_s26] sm:$0xff] %v791_v16  ;;  %v797_v17 = vpack.c.bf16 %v791_v16, %v791_v16 }
 0x220   : > { %939 = vmatmul.mubr.bf16.vlgmr.msra.gmra.mrb[8].mxu1 %v797_v17 }
 0x2f3   : > { %v940_v24 = vpop.f32.mrb[8].mxu1 }
 0x2f4   : > { %v941_v25 = vadd.f32 %v940_v24, %v819_v22  ;;  %v942_v26 = vpop.f32.mrb[9].mxu1 }
 0x2f5   : > { %v943_v27 = vadd.f32 %v942_v26, %v823_v23  ;;  %v944_v28 = vpop.f32.mrb[10].mxu1 }
 0x2f6   : > { %v945_v29 = vpop.f32.mrb[11].mxu1  ;;  %v947_v31 = vpack.c.bf16 %v941_v25, %v941_v25 }
 0x2f7   : > { %v948_v30 = vpack.c.bf16 %v943_v27, %v943_v27 }
 0x2f9   : > { %1116 = vmatprep.mubr.bf16.mxu0 %v948_v30 }
 0x2fa   : > { %1117 = vmatmul.mubr.bf16.vlgmr.msra.gmra.mrb[4].mxu0 %v947_v31 }
 0x3cd   : > { %v1369_v32 = vpop.f32.mrb[4].mxu0 }
 0x3ce   : > { %v1370_v34 = vpop.f32.mrb[5].mxu0 }
 0x3cf   : > { %v1371_v35 = vadd.f32 %v1370_v34, %v1369_v32  ;;  %v1372_v36 = vpop.f32.mrb[6].mxu0 }
 0x3d0   : > { %v1373_v37 = vpop.f32.mrb[7].mxu0 }
 0x3d1   : > { %v1119_v38 = vadd.f32 %v1371_v35, %v1306_v33 }
 0x3d3   : > { %1124 = vst [vmem:[%s480_s17] sm:$0xff] %v1119_v38 }
 0x3d4 PF: > { %s1870_s19 = sld [smem:[#allocation9_spill]] }
 0x3da   : > { %s25_s21 = sadd.s32 1, %s1870_s19  }
 0x3db   : > { %p22_p5 = scmp.ge.s32.totalorder %s25_s21, 4  }
 0x3dd   :  { %24 = sbr.rel (!%p22_p5) target bundleno = 2 (0x2), region = 122 }
 0x3e4   :  { %1158 = vsyncpa [#allocation3], 1 }
 0x3e5   :  { %1160 = vsyncpa [#allocation3 + $0x1], 1 }
 0x3e6   :  { %1161 = vsyncpa [#allocation5], 1 }

</bundles_post_ra>
